<compile_context>
chip_gen: v6e
topology: v6e:2x2x1
jax: 0.10.0
libtpu: 0.0.40
codegen_flags: <defaults>
</compile_context>

<pallas_src>
import functools
import math

import jax
import jax.numpy as jnp
from jax.experimental import pallas as pl
from jax.experimental.pallas import tpu as pltpu


# --------------------------------------------------------------------------
# Kernel
# --------------------------------------------------------------------------
def mha_kernel(q_ref, k_ref, v_ref,
               wq_ref, bq_ref, wk_ref, bk_ref, wv_ref, bv_ref,
               wo_ref, bo_ref, out_ref,
               *, bb, Tq, Tk, n_head, head_dim, matmul_dtype):
    """One grid step == one block of `bb` batch elements (rows flattened).

    q_ref: (bb*Tq, q_dim)      k_ref/v_ref: (bb*Tk, k_dim / v_dim)
    w{q,k,v}_ref: (in_dim, n_feat)   b{q,k,v}_ref: (1, n_feat)  [f32]
    wo_ref: (n_feat, n_pad)          bo_ref: (1, n_pad)          [f32]
    out_ref: (bb*Tq, n_pad)  with n_pad = n_feat rounded up to 128 lanes.
    The 1/sqrt(head_dim) scale is already folded into wq/bq.
    """
    cd = matmul_dtype

    # Fused Q/K/V projections: one tall MXU matmul each, f32 accumulation,
    # one bias broadcast per projection.
    Q = jnp.dot(q_ref[...].astype(cd), wq_ref[...],
                preferred_element_type=jnp.float32) + bq_ref[...]
    K = jnp.dot(k_ref[...].astype(cd), wk_ref[...],
                preferred_element_type=jnp.float32) + bk_ref[...]
    V = jnp.dot(v_ref[...].astype(cd), wv_ref[...],
                preferred_element_type=jnp.float32) + bv_ref[...]

    # Attention phase: small static head loop (unrolled).  The per-head
    # QK^T / PV chains are independent of each other, which keeps v5e's four
    # MXUs fed; with head_dim=8 this phase is EUP/VPU-bound (exp + reductions),
    # not MXU-bound.
    ctx_heads = []
    for h in range(n_head):
        lo = h * head_dim
        Qh = Q[:, lo:lo + head_dim].reshape(bb, Tq, head_dim)
        Kh = K[:, lo:lo + head_dim].reshape(bb, Tk, head_dim)
        Vh = V[:, lo:lo + head_dim].reshape(bb, Tk, head_dim)

        # NT contraction over head_dim (no explicit K transpose), batched
        # over the bb axis.
        s = jnp.einsum("bqd,bkd->bqk", Qh.astype(cd), Kh.astype(cd),
                       preferred_element_type=jnp.float32)        # (bb,Tq,Tk)

        # Numerically stable softmax over keys, kept in f32.
        s = s - jnp.max(s, axis=-1, keepdims=True)
        p = jnp.exp(s)
        denom = jnp.sum(p, axis=-1, keepdims=True)                # (bb,Tq,1)

        # Probabilities stay f32 for the PV matmul (accuracy); normalization
        # is deferred to the small (Tq, d) context via the EUP reciprocal.
        ctx = jnp.einsum("bqk,bkd->bqd", p, Vh,
                         preferred_element_type=jnp.float32)      # (bb,Tq,d)
        ctx = ctx * pl.reciprocal(denom, approx=True)
        ctx_heads.append(ctx.reshape(bb * Tq, head_dim))

    # Lane-contiguous full context -> ONE K=n_feat output projection into the
    # 128-lane-dense padded slab (unmasked store).
    ctx_full = jnp.concatenate(ctx_heads, axis=-1).astype(cd)     # (rows,n_feat)
    out = jnp.dot(ctx_full, wo_ref[...],
                  preferred_element_type=jnp.float32) + bo_ref[...]
    out_ref[...] = out.astype(out_ref.dtype)


# --------------------------------------------------------------------------
# Parameter prep (hoisted out of the per-forward path; run once at load time)
# --------------------------------------------------------------------------
def prepare_mha_params(params, n_head, matmul_dtype=jnp.bfloat16):
    n_feat = params["wq"].shape[1]
    assert n_feat % n_head == 0, "n_feat must be divisible by n_head"
    head_dim = n_feat // n_head
    n_pad = ((n_feat + 127) // 128) * 128          # lane-dense output slab
    scale = 1.0 / math.sqrt(head_dim)

    prepped = {
        "wq": (params["wq"] * scale).astype(matmul_dtype),
        "bq": (params["bq"].reshape(1, n_feat) * scale).astype(jnp.float32),
        "wk": params["wk"].astype(matmul_dtype),
        "bk": params["bk"].reshape(1, n_feat).astype(jnp.float32),
        "wv": params["wv"].astype(matmul_dtype),
        "bv": params["bv"].reshape(1, n_feat).astype(jnp.float32),
        "wo": jnp.pad(params["wo"],
                      ((0, 0), (0, n_pad - n_feat))).astype(matmul_dtype),
        "bo": jnp.pad(params["bo"].reshape(1, n_feat),
                      ((0, 0), (0, n_pad - n_feat))).astype(jnp.float32),
    }
    meta = dict(n_head=n_head, head_dim=head_dim, n_feat=n_feat, n_pad=n_pad,
                matmul_dtype=matmul_dtype)
    return prepped, meta


def _pick_batch_block(B, Tq, Tk, in_dtype, target_rows=512):
    """Smallest aligned batch block giving >=2 grid blocks (v7x megacore) and
    ~<=target_rows rows per block (keeps DMA/compute pipelining effective)."""
    req = max(1, 8 * (4 // jnp.dtype(in_dtype).itemsize))   # sublane pack
    aligned = [bb for bb in range(1, B + 1)
               if B % bb == 0 and (bb * Tq) % req == 0 and (bb * Tk) % req == 0]
    if not aligned:
        return B                     # single full-extent block (full dims OK)
    rows = max(Tq, Tk)
    good = [bb for bb in aligned
            if bb * rows <= target_rows and B // bb >= min(2, B)]
    return good[0] if good else aligned[0]


def _vmem_limit_bytes(bb, Tq, Tk, q_dim, k_dim, v_dim, n_feat, n_pad,
                      in_itemsize, mm_itemsize):
    rq, rk = bb * Tq, bb * Tk
    io = 2 * (rq * q_dim + rk * (k_dim + v_dim)) * in_itemsize + 2 * rq * n_pad * 4
    weights = ((q_dim + k_dim + v_dim) * n_feat + n_feat * n_pad) * mm_itemsize \
              + (3 * n_feat + n_pad) * 4
    interm = (rq + 2 * rk) * n_feat * 4 + bb * Tq * Tk * 4 \
             + 2 * rq * n_feat * 4 + rq * n_pad * 4
    total = 2 * (io + weights + interm)              # headroom for compiler temps
    return int(min(64 * 2 ** 20, max(16 * 2 ** 20, total)))


# --------------------------------------------------------------------------
# Forward
# --------------------------------------------------------------------------
def multi_head_attention_prepared(q, k, v, prepped, meta):
    B, Tq, q_dim = q.shape
    Bk, Tk, k_dim = k.shape
    Bv, Tv, v_dim = v.shape
    assert B == Bk == Bv and Tk == Tv, "batch/seq mismatch between q, k, v"
    assert q_dim == prepped["wq"].shape[0], "q_dim does not match Wq"
    assert k_dim == prepped["wk"].shape[0], "k_dim does not match Wk"
    assert v_dim == prepped["wv"].shape[0], "v_dim does not match Wv"

    n_feat, n_pad = meta["n_feat"], meta["n_pad"]
    n_head, head_dim = meta["n_head"], meta["head_dim"]
    cd = meta["matmul_dtype"]

    bb = _pick_batch_block(B, Tq, Tk, q.dtype)
    nb = B // bb

    # Flatten (B, T, D) -> (B*T, D): contiguous, free in XLA, feeds tall matmuls.
    q2 = q.reshape(B * Tq, q_dim)
    k2 = k.reshape(B * Tk, k_dim)
    v2 = v.reshape(B * Tk, v_dim)

    kernel = functools.partial(
        mha_kernel, bb=bb, Tq=Tq, Tk=Tk, n_head=n_head,
        head_dim=head_dim, matmul_dtype=cd)

    def wspec(arr):
        nd = arr.ndim
        return pl.BlockSpec(arr.shape, lambda i, _nd=nd: (0,) * _nd)

    vmem_bytes = _vmem_limit_bytes(
        bb, Tq, Tk, q_dim, k_dim, v_dim, n_feat, n_pad,
        jnp.dtype(q.dtype).itemsize, jnp.dtype(cd).itemsize)

    out_flat = pl.pallas_call(
        kernel,
        out_shape=jax.ShapeDtypeStruct((B * Tq, n_pad), q.dtype),
        grid=(nb,),
        in_specs=[
            pl.BlockSpec((bb * Tq, q_dim), lambda i: (i, 0)),
            pl.BlockSpec((bb * Tk, k_dim), lambda i: (i, 0)),
            pl.BlockSpec((bb * Tk, v_dim), lambda i: (i, 0)),
            wspec(prepped["wq"]), wspec(prepped["bq"]),
            wspec(prepped["wk"]), wspec(prepped["bk"]),
            wspec(prepped["wv"]), wspec(prepped["bv"]),
            wspec(prepped["wo"]), wspec(prepped["bo"]),
        ],
        out_specs=pl.BlockSpec((bb * Tq, n_pad), lambda i: (i, 0)),
        compiler_params=pltpu.CompilerParams(
            dimension_semantics=("parallel",),
            vmem_limit_bytes=vmem_bytes),
    )(q2, k2, v2,
      prepped["wq"], prepped["bq"], prepped["wk"], prepped["bk"],
      prepped["wv"], prepped["bv"], prepped["wo"], prepped["bo"])

    # Drop the lane padding and restore (B, Tq, n_feat).
    return out_flat[:, :n_feat].reshape(B, Tq, n_feat)


def multi_head_attention(q, k, v, params, n_head, *, matmul_dtype=jnp.bfloat16):
    """Convenience one-shot wrapper (prep + forward). Prefer preparing once."""
    prepped, meta = prepare_mha_params(params, n_head, matmul_dtype)
    return multi_head_attention_prepared(q, k, v, prepped, meta)


# --------------------------------------------------------------------------
# Reference & init (PyTorch-equivalent, eval mode)
# --------------------------------------------------------------------------
def mha_reference(q, k, v, params, n_head):
    B, Tq, _ = q.shape
    n_feat = params["wq"].shape[1]
    d = n_feat // n_head

    Q = q @ params["wq"] + params["bq"][0]
    K = k @ params["wk"] + params["bk"][0]
    V = v @ params["wv"] + params["bv"][0]

    Q = Q.reshape(B, -1, n_head, d).transpose(0, 2, 1, 3)
    K = K.reshape(B, -1, n_head, d).transpose(0, 2, 1, 3)
    V = V.reshape(B, -1, n_head, d).transpose(0, 2, 1, 3)

    scores = jnp.einsum("bhqd,bhkd->bhqk", Q, K) / math.sqrt(d)
    attn = jax.nn.softmax(scores, axis=-1)
    x = jnp.einsum("bhqk,bhkd->bhqd", attn, V)
    x = x.transpose(0, 2, 1, 3).reshape(B, -1, n_feat)
    return x @ params["wo"] + params["bo"][0]


def init_params(key, q_dim, k_dim, v_dim, n_feat, dtype=jnp.float32):
    """PyTorch-like uniform(-1/sqrt(in), 1/sqrt(in)) init.
    Weights stored as (in_features, out_features); biases as (1, n_feat)."""
    keys = jax.random.split(key, 8)

    def lin(kw, kb, in_dim, out_dim):
        bound = 1.0 / math.sqrt(in_dim)
        w = jax.random.uniform(kw, (in_dim, out_dim), dtype, -bound, bound)
        b = jax.random.uniform(kb, (1, out_dim), dtype, -bound, bound)
        return w, b

    wq, bq = lin(keys[0], keys[1], q_dim, n_feat)
    wk, bk = lin(keys[2], keys[3], k_dim, n_feat)
    wv, bv = lin(keys[4], keys[5], v_dim, n_feat)
    wo, bo = lin(keys[6], keys[7], n_feat, n_feat)
    return {"wq": wq, "bq": bq, "wk": wk, "bk": bk,
            "wv": wv, "bv": bv, "wo": wo, "bo": bo}


if __name__ == "__main__":
    # q: (B, Tq, q_dim), k: (B, Tk, k_dim), v: (B, Tk, v_dim)
    B, Tq, Tk = 2, 8, 8
    q_dim = k_dim = v_dim = 16
    n_head, n_feat = 4, 32
    dropout_rate = 0.1  # nn.Dropout is identity in eval mode

    root = jax.random.PRNGKey(0)
    kq, kk, kv, kp = jax.random.split(root, 4)
    q = jax.random.normal(kq, (B, Tq, q_dim), jnp.float32)
    k = jax.random.normal(kk, (B, Tk, k_dim), jnp.float32)
    v = jax.random.normal(kv, (B, Tk, v_dim), jnp.float32)
    params = init_params(kp, q_dim, k_dim, v_dim, n_feat)

    ref = mha_reference(q, k, v, params, n_head)

    # Default path: bf16 MXU operands (weights + QK^T), f32 accumulation and
    # f32 softmax probabilities.  Params prepared ONCE (hoisted prep).
    prepped_bf16, meta_bf16 = prepare_mha_params(params, n_head, jnp.bfloat16)
    out_bf16 = jax.block_until_ready(
        multi_head_attention_prepared(q, k, v, prepped_bf16, meta_bf16))
    assert out_bf16.shape == (B, Tq, n_feat)
    assert jnp.allclose(out_bf16, ref, atol=5e-2, rtol=5e-2), "bf16 mismatch vs reference"

    # f32 path: strict parity with the PyTorch module (approx-reciprocal only).
    prepped_f32, meta_f32 = prepare_mha_params(params, n_head, jnp.float32)
    out_f32 = jax.block_until_ready(
        multi_head_attention_prepared(q, k, v, prepped_f32, meta_f32))
    assert jnp.allclose(out_f32, ref, atol=2e-3, rtol=2e-3), "f32 mismatch vs reference"

    print("KERNEL_OK")
</pallas_src>

<mosaic_0001>
module attributes {stable_mosaic.version = 11 : i64} {
  func.func @mha_kernel(%arg0: i32, %arg1: memref<8x16xf32, #tpu.memory_space<vmem>>, %arg2: memref<8x16xf32, #tpu.memory_space<vmem>>, %arg3: memref<8x16xf32, #tpu.memory_space<vmem>>, %arg4: memref<16x32xbf16, #tpu.memory_space<vmem>>, %arg5: memref<1x32xf32, #tpu.memory_space<vmem>>, %arg6: memref<16x32xbf16, #tpu.memory_space<vmem>>, %arg7: memref<1x32xf32, #tpu.memory_space<vmem>>, %arg8: memref<16x32xbf16, #tpu.memory_space<vmem>>, %arg9: memref<1x32xf32, #tpu.memory_space<vmem>>, %arg10: memref<32x128xbf16, #tpu.memory_space<vmem>>, %arg11: memref<1x128xf32, #tpu.memory_space<vmem>>, %arg12: memref<8x128xf32, #tpu.memory_space<vmem>>) attributes {dimension_semantics = [#tpu.dimension_semantics<parallel>], iteration_bounds = array<i64: 2>, scalar_prefetch = 0 : i64, scratch_operands = 0 : i64, tpu.core_type = #tpu.core_type<tc>, window_params = [{transform_indices = @transform_0, window_bounds = array<i64: 8, 16>}, {transform_indices = @transform_1, window_bounds = array<i64: 8, 16>}, {transform_indices = @transform_2, window_bounds = array<i64: 8, 16>}, {pipeline_mode = #tpu.pipeline_mode<synchronous>, transform_indices = @transform_3, window_bounds = array<i64: 16, 32>}, {pipeline_mode = #tpu.pipeline_mode<synchronous>, transform_indices = @transform_4, window_bounds = array<i64: 1, 32>}, {pipeline_mode = #tpu.pipeline_mode<synchronous>, transform_indices = @transform_5, window_bounds = array<i64: 16, 32>}, {pipeline_mode = #tpu.pipeline_mode<synchronous>, transform_indices = @transform_6, window_bounds = array<i64: 1, 32>}, {pipeline_mode = #tpu.pipeline_mode<synchronous>, transform_indices = @transform_7, window_bounds = array<i64: 16, 32>}, {pipeline_mode = #tpu.pipeline_mode<synchronous>, transform_indices = @transform_8, window_bounds = array<i64: 1, 32>}, {pipeline_mode = #tpu.pipeline_mode<synchronous>, transform_indices = @transform_9, window_bounds = array<i64: 32, 128>}, {pipeline_mode = #tpu.pipeline_mode<synchronous>, transform_indices = @transform_10, window_bounds = array<i64: 1, 128>}, {transform_indices = @transform_11, window_bounds = array<i64: 8, 128>}]} {
    %c0 = arith.constant 0 : index
    %c0_0 = arith.constant 0 : index
    %0 = vector.load %arg1[%c0, %c0_0] : memref<8x16xf32, #tpu.memory_space<vmem>>, vector<8x16xf32>
    %1 = arith.truncf %0 : vector<8x16xf32> to vector<8x16xbf16>
    %c0_1 = arith.constant 0 : index
    %c0_2 = arith.constant 0 : index
    %2 = vector.load %arg4[%c0_1, %c0_2] : memref<16x32xbf16, #tpu.memory_space<vmem>>, vector<16x32xbf16>
    %cst = arith.constant dense<0.000000e+00> : vector<8x32xf32>
    %3 = tpu.matmul %1, %2, %cst {dimension_numbers = #tpu.dot_dimension_numbers<[1], [0], [0], [1], [0, 0, 1, 1], [], []>} : vector<8x16xbf16>, vector<16x32xbf16>, vector<8x32xf32> -> vector<8x32xf32>
    %c0_3 = arith.constant 0 : index
    %c0_4 = arith.constant 0 : index
    %4 = vector.load %arg5[%c0_3, %c0_4] : memref<1x32xf32, #tpu.memory_space<vmem>>, vector<1x32xf32>
    %5 = vector.broadcast %4 : vector<1x32xf32> to vector<8x32xf32>
    %6 = arith.addf %3, %5 : vector<8x32xf32>
    %c0_5 = arith.constant 0 : index
    %c0_6 = arith.constant 0 : index
    %7 = vector.load %arg2[%c0_5, %c0_6] : memref<8x16xf32, #tpu.memory_space<vmem>>, vector<8x16xf32>
    %8 = arith.truncf %7 : vector<8x16xf32> to vector<8x16xbf16>
    %c0_7 = arith.constant 0 : index
    %c0_8 = arith.constant 0 : index
    %9 = vector.load %arg6[%c0_7, %c0_8] : memref<16x32xbf16, #tpu.memory_space<vmem>>, vector<16x32xbf16>
    %cst_9 = arith.constant dense<0.000000e+00> : vector<8x32xf32>
    %10 = tpu.matmul %8, %9, %cst_9 {dimension_numbers = #tpu.dot_dimension_numbers<[1], [0], [0], [1], [0, 0, 1, 1], [], []>} : vector<8x16xbf16>, vector<16x32xbf16>, vector<8x32xf32> -> vector<8x32xf32>
    %c0_10 = arith.constant 0 : index
    %c0_11 = arith.constant 0 : index
    %11 = vector.load %arg7[%c0_10, %c0_11] : memref<1x32xf32, #tpu.memory_space<vmem>>, vector<1x32xf32>
    %12 = vector.broadcast %11 : vector<1x32xf32> to vector<8x32xf32>
    %13 = arith.addf %10, %12 : vector<8x32xf32>
    %c0_12 = arith.constant 0 : index
    %c0_13 = arith.constant 0 : index
    %14 = vector.load %arg3[%c0_12, %c0_13] : memref<8x16xf32, #tpu.memory_space<vmem>>, vector<8x16xf32>
    %15 = arith.truncf %14 : vector<8x16xf32> to vector<8x16xbf16>
    %c0_14 = arith.constant 0 : index
    %c0_15 = arith.constant 0 : index
    %16 = vector.load %arg8[%c0_14, %c0_15] : memref<16x32xbf16, #tpu.memory_space<vmem>>, vector<16x32xbf16>
    %cst_16 = arith.constant dense<0.000000e+00> : vector<8x32xf32>
    %17 = tpu.matmul %15, %16, %cst_16 {dimension_numbers = #tpu.dot_dimension_numbers<[1], [0], [0], [1], [0, 0, 1, 1], [], []>} : vector<8x16xbf16>, vector<16x32xbf16>, vector<8x32xf32> -> vector<8x32xf32>
    %c0_17 = arith.constant 0 : index
    %c0_18 = arith.constant 0 : index
    %18 = vector.load %arg9[%c0_17, %c0_18] : memref<1x32xf32, #tpu.memory_space<vmem>>, vector<1x32xf32>
    %19 = vector.broadcast %18 : vector<1x32xf32> to vector<8x32xf32>
    %20 = arith.addf %17, %19 : vector<8x32xf32>
    %21 = vector.extract_strided_slice %6 {offsets = [0, 0], sizes = [8, 8], strides = [1, 1]} : vector<8x32xf32> to vector<8x8xf32>
    %22 = vector.shape_cast %21 : vector<8x8xf32> to vector<1x8x8xf32>
    %23 = vector.extract_strided_slice %13 {offsets = [0, 0], sizes = [8, 8], strides = [1, 1]} : vector<8x32xf32> to vector<8x8xf32>
    %24 = vector.shape_cast %23 : vector<8x8xf32> to vector<1x8x8xf32>
    %25 = vector.extract_strided_slice %20 {offsets = [0, 0], sizes = [8, 8], strides = [1, 1]} : vector<8x32xf32> to vector<8x8xf32>
    %26 = vector.shape_cast %25 : vector<8x8xf32> to vector<1x8x8xf32>
    %27 = arith.truncf %22 : vector<1x8x8xf32> to vector<1x8x8xbf16>
    %28 = arith.truncf %24 : vector<1x8x8xf32> to vector<1x8x8xbf16>
    "tpu.trace_start"() <{level = 10 : i32, message = "bqd,bkd->bqk"}> : () -> ()
    %cst_19 = arith.constant dense<0.000000e+00> : vector<1x8x8xf32>
    %29 = tpu.matmul %27, %28, %cst_19 {dimension_numbers = #tpu.dot_dimension_numbers<[2], [2], [1], [1], [0, 0, 0, 1, 1, 1], [0], [0]>} : vector<1x8x8xbf16>, vector<1x8x8xbf16>, vector<1x8x8xf32> -> vector<1x8x8xf32>
    "tpu.trace_stop"() : () -> ()
    %cst_20 = arith.constant dense<0xFF800000> : vector<1x8xf32>
    %30 = vector.multi_reduction <maximumf>, %29, %cst_20 [2] : vector<1x8x8xf32> to vector<1x8xf32>
    %31 = vector.shape_cast %30 : vector<1x8xf32> to vector<1x8x1xf32>
    %32 = vector.broadcast %31 : vector<1x8x1xf32> to vector<1x8x8xf32>
    %33 = arith.subf %29, %32 : vector<1x8x8xf32>
    %34 = math.exp %33 : vector<1x8x8xf32>
    %cst_21 = arith.constant dense<0.000000e+00> : vector<1x8xf32>
    %35 = vector.multi_reduction <add>, %34, %cst_21 [2] : vector<1x8x8xf32> to vector<1x8xf32>
    %36 = vector.shape_cast %35 : vector<1x8xf32> to vector<1x8x1xf32>
    "tpu.trace_start"() <{level = 10 : i32, message = "bqk,bkd->bqd"}> : () -> ()
    %cst_22 = arith.constant dense<0.000000e+00> : vector<1x8x8xf32>
    %37 = tpu.matmul %34, %26, %cst_22 {dimension_numbers = #tpu.dot_dimension_numbers<[2], [1], [1], [2], [0, 0, 0, 1, 1, 2], [0], [0]>} : vector<1x8x8xf32>, vector<1x8x8xf32>, vector<1x8x8xf32> -> vector<1x8x8xf32>
    "tpu.trace_stop"() : () -> ()
    %38 = tpu.reciprocal %36 {approx = true} : vector<1x8x1xf32> -> vector<1x8x1xf32>
    %39 = vector.broadcast %38 : vector<1x8x1xf32> to vector<1x8x8xf32>
    %40 = arith.mulf %37, %39 : vector<1x8x8xf32>
    %41 = vector.shape_cast %40 : vector<1x8x8xf32> to vector<8x8xf32>
    %42 = vector.extract_strided_slice %6 {offsets = [0, 8], sizes = [8, 8], strides = [1, 1]} : vector<8x32xf32> to vector<8x8xf32>
    %43 = vector.shape_cast %42 : vector<8x8xf32> to vector<1x8x8xf32>
    %44 = vector.extract_strided_slice %13 {offsets = [0, 8], sizes = [8, 8], strides = [1, 1]} : vector<8x32xf32> to vector<8x8xf32>
    %45 = vector.shape_cast %44 : vector<8x8xf32> to vector<1x8x8xf32>
    %46 = vector.extract_strided_slice %20 {offsets = [0, 8], sizes = [8, 8], strides = [1, 1]} : vector<8x32xf32> to vector<8x8xf32>
    %47 = vector.shape_cast %46 : vector<8x8xf32> to vector<1x8x8xf32>
    %48 = arith.truncf %43 : vector<1x8x8xf32> to vector<1x8x8xbf16>
    %49 = arith.truncf %45 : vector<1x8x8xf32> to vector<1x8x8xbf16>
    "tpu.trace_start"() <{level = 10 : i32, message = "bqd,bkd->bqk"}> : () -> ()
    %cst_23 = arith.constant dense<0.000000e+00> : vector<1x8x8xf32>
    %50 = tpu.matmul %48, %49, %cst_23 {dimension_numbers = #tpu.dot_dimension_numbers<[2], [2], [1], [1], [0, 0, 0, 1, 1, 1], [0], [0]>} : vector<1x8x8xbf16>, vector<1x8x8xbf16>, vector<1x8x8xf32> -> vector<1x8x8xf32>
    "tpu.trace_stop"() : () -> ()
    %cst_24 = arith.constant dense<0xFF800000> : vector<1x8xf32>
    %51 = vector.multi_reduction <maximumf>, %50, %cst_24 [2] : vector<1x8x8xf32> to vector<1x8xf32>
    %52 = vector.shape_cast %51 : vector<1x8xf32> to vector<1x8x1xf32>
    %53 = vector.broadcast %52 : vector<1x8x1xf32> to vector<1x8x8xf32>
    %54 = arith.subf %50, %53 : vector<1x8x8xf32>
    %55 = math.exp %54 : vector<1x8x8xf32>
    %cst_25 = arith.constant dense<0.000000e+00> : vector<1x8xf32>
    %56 = vector.multi_reduction <add>, %55, %cst_25 [2] : vector<1x8x8xf32> to vector<1x8xf32>
    %57 = vector.shape_cast %56 : vector<1x8xf32> to vector<1x8x1xf32>
    "tpu.trace_start"() <{level = 10 : i32, message = "bqk,bkd->bqd"}> : () -> ()
    %cst_26 = arith.constant dense<0.000000e+00> : vector<1x8x8xf32>
    %58 = tpu.matmul %55, %47, %cst_26 {dimension_numbers = #tpu.dot_dimension_numbers<[2], [1], [1], [2], [0, 0, 0, 1, 1, 2], [0], [0]>} : vector<1x8x8xf32>, vector<1x8x8xf32>, vector<1x8x8xf32> -> vector<1x8x8xf32>
    "tpu.trace_stop"() : () -> ()
    %59 = tpu.reciprocal %57 {approx = true} : vector<1x8x1xf32> -> vector<1x8x1xf32>
    %60 = vector.broadcast %59 : vector<1x8x1xf32> to vector<1x8x8xf32>
    %61 = arith.mulf %58, %60 : vector<1x8x8xf32>
    %62 = vector.shape_cast %61 : vector<1x8x8xf32> to vector<8x8xf32>
    %63 = vector.extract_strided_slice %6 {offsets = [0, 16], sizes = [8, 8], strides = [1, 1]} : vector<8x32xf32> to vector<8x8xf32>
    %64 = vector.shape_cast %63 : vector<8x8xf32> to vector<1x8x8xf32>
    %65 = vector.extract_strided_slice %13 {offsets = [0, 16], sizes = [8, 8], strides = [1, 1]} : vector<8x32xf32> to vector<8x8xf32>
    %66 = vector.shape_cast %65 : vector<8x8xf32> to vector<1x8x8xf32>
    %67 = vector.extract_strided_slice %20 {offsets = [0, 16], sizes = [8, 8], strides = [1, 1]} : vector<8x32xf32> to vector<8x8xf32>
    %68 = vector.shape_cast %67 : vector<8x8xf32> to vector<1x8x8xf32>
    %69 = arith.truncf %64 : vector<1x8x8xf32> to vector<1x8x8xbf16>
    %70 = arith.truncf %66 : vector<1x8x8xf32> to vector<1x8x8xbf16>
    "tpu.trace_start"() <{level = 10 : i32, message = "bqd,bkd->bqk"}> : () -> ()
    %cst_27 = arith.constant dense<0.000000e+00> : vector<1x8x8xf32>
    %71 = tpu.matmul %69, %70, %cst_27 {dimension_numbers = #tpu.dot_dimension_numbers<[2], [2], [1], [1], [0, 0, 0, 1, 1, 1], [0], [0]>} : vector<1x8x8xbf16>, vector<1x8x8xbf16>, vector<1x8x8xf32> -> vector<1x8x8xf32>
    "tpu.trace_stop"() : () -> ()
    %cst_28 = arith.constant dense<0xFF800000> : vector<1x8xf32>
    %72 = vector.multi_reduction <maximumf>, %71, %cst_28 [2] : vector<1x8x8xf32> to vector<1x8xf32>
    %73 = vector.shape_cast %72 : vector<1x8xf32> to vector<1x8x1xf32>
    %74 = vector.broadcast %73 : vector<1x8x1xf32> to vector<1x8x8xf32>
    %75 = arith.subf %71, %74 : vector<1x8x8xf32>
    %76 = math.exp %75 : vector<1x8x8xf32>
    %cst_29 = arith.constant dense<0.000000e+00> : vector<1x8xf32>
    %77 = vector.multi_reduction <add>, %76, %cst_29 [2] : vector<1x8x8xf32> to vector<1x8xf32>
    %78 = vector.shape_cast %77 : vector<1x8xf32> to vector<1x8x1xf32>
    "tpu.trace_start"() <{level = 10 : i32, message = "bqk,bkd->bqd"}> : () -> ()
    %cst_30 = arith.constant dense<0.000000e+00> : vector<1x8x8xf32>
    %79 = tpu.matmul %76, %68, %cst_30 {dimension_numbers = #tpu.dot_dimension_numbers<[2], [1], [1], [2], [0, 0, 0, 1, 1, 2], [0], [0]>} : vector<1x8x8xf32>, vector<1x8x8xf32>, vector<1x8x8xf32> -> vector<1x8x8xf32>
    "tpu.trace_stop"() : () -> ()
    %80 = tpu.reciprocal %78 {approx = true} : vector<1x8x1xf32> -> vector<1x8x1xf32>
    %81 = vector.broadcast %80 : vector<1x8x1xf32> to vector<1x8x8xf32>
    %82 = arith.mulf %79, %81 : vector<1x8x8xf32>
    %83 = vector.shape_cast %82 : vector<1x8x8xf32> to vector<8x8xf32>
    %84 = vector.extract_strided_slice %6 {offsets = [0, 24], sizes = [8, 8], strides = [1, 1]} : vector<8x32xf32> to vector<8x8xf32>
    %85 = vector.shape_cast %84 : vector<8x8xf32> to vector<1x8x8xf32>
    %86 = vector.extract_strided_slice %13 {offsets = [0, 24], sizes = [8, 8], strides = [1, 1]} : vector<8x32xf32> to vector<8x8xf32>
    %87 = vector.shape_cast %86 : vector<8x8xf32> to vector<1x8x8xf32>
    %88 = vector.extract_strided_slice %20 {offsets = [0, 24], sizes = [8, 8], strides = [1, 1]} : vector<8x32xf32> to vector<8x8xf32>
    %89 = vector.shape_cast %88 : vector<8x8xf32> to vector<1x8x8xf32>
    %90 = arith.truncf %85 : vector<1x8x8xf32> to vector<1x8x8xbf16>
    %91 = arith.truncf %87 : vector<1x8x8xf32> to vector<1x8x8xbf16>
    "tpu.trace_start"() <{level = 10 : i32, message = "bqd,bkd->bqk"}> : () -> ()
    %cst_31 = arith.constant dense<0.000000e+00> : vector<1x8x8xf32>
    %92 = tpu.matmul %90, %91, %cst_31 {dimension_numbers = #tpu.dot_dimension_numbers<[2], [2], [1], [1], [0, 0, 0, 1, 1, 1], [0], [0]>} : vector<1x8x8xbf16>, vector<1x8x8xbf16>, vector<1x8x8xf32> -> vector<1x8x8xf32>
    "tpu.trace_stop"() : () -> ()
    %cst_32 = arith.constant dense<0xFF800000> : vector<1x8xf32>
    %93 = vector.multi_reduction <maximumf>, %92, %cst_32 [2] : vector<1x8x8xf32> to vector<1x8xf32>
    %94 = vector.shape_cast %93 : vector<1x8xf32> to vector<1x8x1xf32>
    %95 = vector.broadcast %94 : vector<1x8x1xf32> to vector<1x8x8xf32>
    %96 = arith.subf %92, %95 : vector<1x8x8xf32>
    %97 = math.exp %96 : vector<1x8x8xf32>
    %cst_33 = arith.constant dense<0.000000e+00> : vector<1x8xf32>
    %98 = vector.multi_reduction <add>, %97, %cst_33 [2] : vector<1x8x8xf32> to vector<1x8xf32>
    %99 = vector.shape_cast %98 : vector<1x8xf32> to vector<1x8x1xf32>
    "tpu.trace_start"() <{level = 10 : i32, message = "bqk,bkd->bqd"}> : () -> ()
    %cst_34 = arith.constant dense<0.000000e+00> : vector<1x8x8xf32>
    %100 = tpu.matmul %97, %89, %cst_34 {dimension_numbers = #tpu.dot_dimension_numbers<[2], [1], [1], [2], [0, 0, 0, 1, 1, 2], [0], [0]>} : vector<1x8x8xf32>, vector<1x8x8xf32>, vector<1x8x8xf32> -> vector<1x8x8xf32>
    "tpu.trace_stop"() : () -> ()
    %101 = tpu.reciprocal %99 {approx = true} : vector<1x8x1xf32> -> vector<1x8x1xf32>
    %102 = vector.broadcast %101 : vector<1x8x1xf32> to vector<1x8x8xf32>
    %103 = arith.mulf %100, %102 : vector<1x8x8xf32>
    %104 = vector.shape_cast %103 : vector<1x8x8xf32> to vector<8x8xf32>
    %105 = tpu.concatenate %41, %62, %83, %104 in 1 : vector<8x8xf32>, vector<8x8xf32>, vector<8x8xf32>, vector<8x8xf32> -> vector<8x32xf32>
    %106 = arith.truncf %105 : vector<8x32xf32> to vector<8x32xbf16>
    %c0_35 = arith.constant 0 : index
    %c0_36 = arith.constant 0 : index
    %107 = vector.load %arg10[%c0_35, %c0_36] : memref<32x128xbf16, #tpu.memory_space<vmem>>, vector<32x128xbf16>
    %cst_37 = arith.constant dense<0.000000e+00> : vector<8x128xf32>
    %108 = tpu.matmul %106, %107, %cst_37 {dimension_numbers = #tpu.dot_dimension_numbers<[1], [0], [0], [1], [0, 0, 1, 1], [], []>} : vector<8x32xbf16>, vector<32x128xbf16>, vector<8x128xf32> -> vector<8x128xf32>
    %c0_38 = arith.constant 0 : index
    %c0_39 = arith.constant 0 : index
    %109 = vector.load %arg11[%c0_38, %c0_39] : memref<1x128xf32, #tpu.memory_space<vmem>>, vector<1x128xf32>
    %110 = vector.broadcast %109 : vector<1x128xf32> to vector<8x128xf32>
    %111 = arith.addf %108, %110 : vector<8x128xf32>
    %c0_40 = arith.constant 0 : index
    %c0_41 = arith.constant 0 : index
    %112 = vector.load %arg12[%c0_40, %c0_41] : memref<8x128xf32, #tpu.memory_space<vmem>>, vector<8x128xf32>
    tpu.vector_store %arg12[%c0_40, %c0_41], %111 {strides = array<i32>} : memref<8x128xf32, #tpu.memory_space<vmem>>, vector<8x128xf32>,
    return
  }
  func.func @transform_0(%arg0: i32) -> (i32, i32) {
    %c0_i32 = arith.constant 0 : i32
    %c0_i32_0 = arith.constant 0 : i32
    return %arg0, %c0_i32 : i32, i32
  }
  func.func @transform_1(%arg0: i32) -> (i32, i32) {
    %c0_i32 = arith.constant 0 : i32
    %c0_i32_0 = arith.constant 0 : i32
    return %arg0, %c0_i32 : i32, i32
  }
  func.func @transform_2(%arg0: i32) -> (i32, i32) {
    %c0_i32 = arith.constant 0 : i32
    %c0_i32_0 = arith.constant 0 : i32
    return %arg0, %c0_i32 : i32, i32
  }
  func.func @transform_3(%arg0: i32) -> (i32, i32) {
    %c0_i32 = arith.constant 0 : i32
    %c0_i32_0 = arith.constant 0 : i32
    %c0_i32_1 = arith.constant 0 : i32
    return %c0_i32, %c0_i32_0 : i32, i32
  }
  func.func @transform_4(%arg0: i32) -> (i32, i32) {
    %c0_i32 = arith.constant 0 : i32
    %c0_i32_0 = arith.constant 0 : i32
    %c0_i32_1 = arith.constant 0 : i32
    return %c0_i32, %c0_i32_0 : i32, i32
  }
  func.func @transform_5(%arg0: i32) -> (i32, i32) {
    %c0_i32 = arith.constant 0 : i32
    %c0_i32_0 = arith.constant 0 : i32
    %c0_i32_1 = arith.constant 0 : i32
    return %c0_i32, %c0_i32_0 : i32, i32
  }
  func.func @transform_6(%arg0: i32) -> (i32, i32) {
    %c0_i32 = arith.constant 0 : i32
    %c0_i32_0 = arith.constant 0 : i32
    %c0_i32_1 = arith.constant 0 : i32
    return %c0_i32, %c0_i32_0 : i32, i32
  }
  func.func @transform_7(%arg0: i32) -> (i32, i32) {
    %c0_i32 = arith.constant 0 : i32
    %c0_i32_0 = arith.constant 0 : i32
    %c0_i32_1 = arith.constant 0 : i32
    return %c0_i32, %c0_i32_0 : i32, i32
  }
  func.func @transform_8(%arg0: i32) -> (i32, i32) {
    %c0_i32 = arith.constant 0 : i32
    %c0_i32_0 = arith.constant 0 : i32
    %c0_i32_1 = arith.constant 0 : i32
    return %c0_i32, %c0_i32_0 : i32, i32
  }
  func.func @transform_9(%arg0: i32) -> (i32, i32) {
    %c0_i32 = arith.constant 0 : i32
    %c0_i32_0 = arith.constant 0 : i32
    %c0_i32_1 = arith.constant 0 : i32
    return %c0_i32, %c0_i32_0 : i32, i32
  }
  func.func @transform_10(%arg0: i32) -> (i32, i32) {
    %c0_i32 = arith.constant 0 : i32
    %c0_i32_0 = arith.constant 0 : i32
    %c0_i32_1 = arith.constant 0 : i32
    return %c0_i32, %c0_i32_0 : i32, i32
  }
  func.func @transform_11(%arg0: i32) -> (i32, i32) {
    %c0_i32 = arith.constant 0 : i32
    %c0_i32_0 = arith.constant 0 : i32
    return %arg0, %c0_i32 : i32, i32
  }
}

</mosaic_0001>

<bundles_post_ra>
// kernel: tpu_custom_call.1
= control target key start
LH: loop header
LB: loop body
LE: loop exit
PB: predicated region body
PF: predicated region fallthrough
CT: control target
= control target key end

     0   :  { %s2634_s0 = inlined_call_operand.hbm [shape: f32[16,16], index: 0, kind: input, shape index: {}]   ;;  %s2635_s1 = inlined_call_operand.hbm [shape: f32[16,16], index: 1, kind: input, shape index: {}]   ;;  %s2636_s2 = inlined_call_operand.hbm [shape: f32[16,16], index: 2, kind: input, shape index: {}]   ;;  %s2637_s3 = inlined_call_operand.hbm [shape: bf16[16,32], index: 3, kind: input, shape index: {}]   ;;  %s2638_s4 = inlined_call_operand.hbm [shape: f32[1,32], index: 4, kind: input, shape index: {}]   ;;  %s2639_s5 = inlined_call_operand.hbm [shape: bf16[16,32], index: 5, kind: input, shape index: {}]   ;;  %s2640_s6 = inlined_call_operand.hbm [shape: f32[1,32], index: 6, kind: input, shape index: {}]   ;;  %s2641_s7 = inlined_call_operand.hbm [shape: bf16[16,32], index: 7, kind: input, shape index: {}]   ;;  %s2642_s8 = inlined_call_operand.hbm [shape: f32[1,32], index: 8, kind: input, shape index: {}]   ;;  %s2643_s9 = inlined_call_operand.vmem [shape: bf16[32,128], index: 9, kind: input, shape index: {}]   ;;  %s2644_s10 = inlined_call_operand.vmem [shape: f32[1,128], index: 10, kind: input, shape index: {}]   ;;  %s2645_s11 = inlined_call_operand.hbm [shape: f32[16,128], index: 11, kind: output, shape index: {}]  }
   0x1   :  { %2665 = sst [smem:[#allocation30_spill]] %s2637_s3 }
   0x2   :  { %2666 = sst [smem:[#allocation31_spill]] %s2639_s5 }
   0x3   :  { %2667 = sst [smem:[#allocation32_spill]] %s2641_s7 }
   0x4   :  { %2668 = sst [smem:[#allocation33_spill]] %s2644_s10 }
   0x5   :  { %2669 = sst [smem:[#allocation34_spill]] %s2645_s11 }
   0x6   :  { %16 = vsyncpa [#allocation3], 0 }
   0x7   :  { %18 = vsyncpa [#allocation3 + $0x1], 0 }
   0x8   :  { %19 = vsyncpa [#allocation6], 0 }
   0x9   :  { %21 = vsyncpa [#allocation6 + $0x1], 0 }
   0xa   :  { %22 = vsyncpa [#allocation9], 0 }
   0xb   :  { %23 = vsyncpa [#allocation12], 0 }
   0xc   :  { %24 = vsyncpa [#allocation15], 0 }
   0xd   :  { %25 = vsyncpa [#allocation4], 0 }
   0xe   :  { %27 = vsyncpa [#allocation4 + $0x1], 0  ;;  %s2248_s17 = smov 0   ;;  %s2250_s18 = smov 0  }
   0xf   :  { %s2252_s19 = smov 0   ;;  %s2254_s20 = smov 0  }
  0x10 LB: > { %2670 = sst [smem:[#allocation24_spill]] %s2154_s17  ;;  %s2168_s21 = smov [#allocation8]   ;;  %s2166_s20 = sphi %s2254_s20, %s2708_s20   ;;  %s2162_s19 = sphi %s2252_s19, %s2712_s19   ;;  %s2158_s18 = sphi %s2250_s18, %s2711_s18   ;;  %s2154_s17 = sphi %s2248_s17, %s2710_s17  }
  0x11   : > { %2671 = sst [smem:[#allocation25_spill]] %s2166_s20  ;;  %s322_s22 = sshll.u32 %s2168_s21, 4  ;;  %s323_s22 = int_to_ptr.vmem [resolvable:$true] %s322_s22 }
  0x12   : > { %s2269_s23 = sadd.s32 4294967295, %s2166_s20   ;;  %p1553_p0 = scmp.ge.s32.totalorder %s2166_s20, 1 }
  0x13   : > { %p2653_p1 = scmp.eq.s32.totalorder %s2269_s23, 0  ;;  %p310_p2 = scmp.lt.s32.totalorder %s2166_s20, 3 }
  0x14   : > { %s2169_s25 = smov [#allocation11]   ;;  %s2170_s28 = smov [#allocation14]  }
  0x15   : > { %p2274_p3 = pnand %p1553_p0, %p310_p2  ;;  %s346_s26 = sshll.u32 %s2169_s25, 4  ;;  %s2287_s26 = int_to_ptr.vmem [resolvable:$true] %s346_s26 }
  0x16   : > { %s370_s29 = sshll.u32 %s2170_s28, 4  ;;  %s1857_s12 = scalar_lea.vmem %s323_s22, 128  ;;  %s2289_s29 = int_to_ptr.vmem [resolvable:$true] %s370_s29 }
  0x17   : > { %s2672_s24 = scalar_select %p2274_p3, 1, 0 }
  0x18   : > { %p1730_p5 = pneg %p2274_p3  ;;  %p1858_p8 = scmp.ne.s32.totalorder %s323_s22, %s1857_s12 }
  0x19   : > { %p1865_p11 = scmp.lt.s32.totalorder %s323_s22, %s323_s22  ;;  %p1866_p12 = scmp.lt.s32.totalorder %s1857_s12, %s1857_s12 }
  0x1a   : > { %p2283_p6 = pnand %p1730_p5, %p2653_p1 }
  0x1b   : > { %p1867_p13 = por %p1866_p12, %p1865_p11 }
  0x1c   : > { %s2673_s27 = scalar_select %p2283_p6, 1, 0 }
  0x1d   : > { %p2293_p7 = pneg %p2283_p6 }
  0x1f   : > { %s2674_s30 = scalar_select %p2293_p7, 1, 0 }
  0x20   : > { %p1860_p9 = pnand %p1858_p8, %p2293_p7 }
  0x22   : > { %p1861_p10 = pneg %p1860_p9 }
  0x24   : > { %p1868_p0 = pnand %p1867_p13, %p1861_p10 }
  0x26   : > { %1871 = shalt.err (!%p1868_p0)
}
  0x27   : > { %s2171_s13 = smov 64   ;;  %s2172_s14 = smov 4  }
  0x28   : > { %s2675_s3 = sld [smem:[#allocation30_spill]]  ;;  %s1883_s21 = scalar_lea.vmem %s2287_s26, 128 }
  0x29   : > { %p1884_p2 = scmp.ne.s32.totalorder %s2287_s26, %s1883_s21  ;;  %p1891_p9 = scmp.lt.s32.totalorder %s2287_s26, %s2287_s26 }
  0x2a   : > { %p1892_p10 = scmp.lt.s32.totalorder %s1883_s21, %s1883_s21 }
  0x2b   : > { %p1886_p5 = pnand %p1884_p2, %p2293_p7 }
  0x2c   : > { %p1893_p11 = por %p1892_p10, %p1891_p9 }
  0x2d   : > { %p1887_p8 = pneg %p1886_p5 }
  0x2e   : > { %1733 = dma.hbm_to_vmem [thread:$0]  (!%p2283_p6), %s2675_s3, 128, %s323_s22, [#allocation9], %s2171_s13, %s2171_s13, %s2172_s14  }
  0x2f   : > { %p1894_p12 = pnand %p1893_p11, %p1887_p8 }
  0x31   : > { %1897 = shalt.err (!%p1894_p12)
}
  0x32   : > { %s2676_s5 = sld [smem:[#allocation31_spill]]  ;;  %s1909_s22 = scalar_lea.vmem %s2289_s29, 128 }
  0x33   : > { %p1910_p13 = scmp.ne.s32.totalorder %s2289_s29, %s1909_s22  ;;  %p1917_p5 = scmp.lt.s32.totalorder %s2289_s29, %s2289_s29 }
  0x34   : > { %p1918_p8 = scmp.lt.s32.totalorder %s1909_s22, %s1909_s22 }
  0x35   : > { %p1912_p0 = pnand %p1910_p13, %p2293_p7 }
  0x36   : > { %p1919_p9 = por %p1918_p8, %p1917_p5 }
  0x37   : > { %p1913_p2 = pneg %p1912_p0 }
  0x38   : > { %1739 = dma.hbm_to_vmem [thread:$0]  (!%p2283_p6), %s2676_s5, 128, %s2287_s26, [#allocation12], %s2171_s13, %s2171_s13, %s2172_s14  }
  0x39   : > { %p1920_p10 = pnand %p1919_p9, %p1913_p2 }
  0x3b   : > { %1923 = shalt.err (!%p1920_p10)
}
  0x3c   : > { %s2677_s7 = sld [smem:[#allocation32_spill]]  ;;  %s1552_s26 = sadd.s32 4294967294, %s2166_s20  }
  0x3d   : > { %s2330_s16 = sadd.s32 1, %s2166_s20   ;;  %s40_s21 = sadd.s32 1, %s2162_s19 }
  0x3e   : > { %2678 = sst [smem:[#allocation26_spill]] %s2330_s16  ;;  %s37_s25 = ssub.s32 %s2166_s20, %s2330_s16 }
  0x3f   : > { %p47_p11 = scmp.ne.s32.totalorder %s2162_s19, %s2158_s18  ;;  %p38_p12 = scmp.eq.s32.totalorder %s37_s25, 0 }
  0x40   : > { %p48_p13 = scmp.eq.s32.totalorder %s2166_s20, 0  ;;  %p53_p0 = scmp.ne.s32.totalorder %s2158_s18, %s2154_s17 }
  0x41   : > { %p297_p2 = scmp.eq.s32.totalorder %s2269_s23, 1  ;;  %p303_p10 = scmp.eq.s32.totalorder %s1552_s26, 1 }
  0x42   : > { %1745 = dma.hbm_to_vmem [thread:$0]  (!%p2283_p6), %s2677_s7, 128, %s2289_s29, [#allocation15], %s2171_s13, %s2171_s13, %s2172_s14  }
  0x43   : > { %s2342_s28 = scalar_select %p38_p12, %s2162_s19, %s40_s21  }
  0x44   : > { %p49_p5 = por %p48_p13, %p47_p11  ;;  %p2346_p8 = por %p2653_p1, %p53_p0 }
  0x45   : > { %2679 = sst [smem:[#allocation27_spill]] %s2342_s28  ;;  %p2350_p9 = por %p297_p2, %p47_p11 }
  0x46   : > { %s2680_s29 = scalar_select %p2346_p8, 1, 0 }
  0x47   : > { %s2681_s13 = scalar_select %p2350_p9, 1, 0 }
  0x48   : > { %p1769_p4 = scmp.lt.s32.totalorder %s2166_s20, 2  ;;  %s2647_s14 = sand.u32 1, %s2162_s19  }
  0x49   : > { %2682 = sst [smem:[#allocation28_spill]] %s2681_s13  ;;  %p2356_p3 = por %p303_p10, %p53_p0 }
  0x4a   : > { %s2362_s12 = sshll.u32 %s2647_s14, 3  ;;  %s2365_s15 = sshll.u32 %s2166_s20, 7 }
  0x4b   : > { %s2683_s22 = scalar_select %p2356_p3, 1, 0 }
  0x4c   : > { %p2367_p12 = pnand %p1769_p4, %p49_p5  ;;  %s419_s25 = sand.u32 1, %s2166_s20  }
  0x4d   : > { %2684 = sst [smem:[#allocation29_spill]] %s2683_s22  ;;  %s2376_s5 = scalar_lea.hbm %s2635_s1, %s2365_s15 }
  0x4e   : > { %s2685_s21 = scalar_select %p2367_p12, 1, 0 }
  0x4f   : > { %s423_s14 = scalar_lea.vmem [#allocation5], %s2362_s12  ;;  %s2379_s28 = scalar_lea.sflag [#allocation6], %s419_s25 }
  0x50   : > { %s430_s7 = sshll.u32 %s423_s14, 4  ;;  %s1924_s16 = scalar_lea.hbm %s2376_s5, 128  ;;  %s431_s7 = int_to_ptr.vmem [resolvable:$true] %s430_s7 }
  0x51   : > { %p1925_p4 = scmp.ne.s32.totalorder %s2376_s5, %s1924_s16  ;;  %p2385_p11 = pneg %p2367_p12 }
  0x52   : > { %s1929_s20 = scalar_lea.hbm %s2635_s1, 256  ;;  %p1930_p2 = scmp.lt.s32.totalorder %s2376_s5, %s2635_s1 }
  0x53   : > { %p1927_p13 = pnand %p2385_p11, %p1925_p4  ;;  %p1931_p5 = scmp.lt.s32.totalorder %s1929_s20, %s1924_s16 }
  0x55   : > { %p1928_p0 = pneg %p1927_p13  ;;  %p1932_p10 = por %p1931_p5, %p1930_p2 }
  0x57   : > { %p1933_p1 = pnand %p1932_p10, %p1928_p0 }
  0x59   : > { %1936 = shalt.err (!%p1933_p1)
}
  0x5a   : > { %s1937_s25 = scalar_lea.vmem %s431_s7, 128  ;;  %s2173_s11 = smov [#allocation5]  }
  0x5b   : > { %p1938_p3 = scmp.ne.s32.totalorder %s431_s7, %s1937_s25  ;;  %s1942_s10 = sshll.u32 %s2173_s11, 4  ;;  %s1943_s10 = int_to_ptr.vmem [resolvable:$false] %s1942_s10 }
  0x5c   : > { %s1944_s13 = scalar_lea.vmem %s1943_s10, 256  ;;  %p1945_p4 = scmp.lt.s32.totalorder %s431_s7, %s1943_s10 }
  0x5d   : > { %p1940_p9 = pnand %p1938_p3, %p2385_p11  ;;  %p1946_p13 = scmp.lt.s32.totalorder %s1944_s13, %s1937_s25 }
  0x5f   : > { %p1941_p8 = pneg %p1940_p9  ;;  %p1947_p6 = por %p1946_p13, %p1945_p4 }
  0x61   : > { %p1948_p7 = pnand %p1947_p6, %p1941_p8 }
  0x63   : > { %1951 = shalt.err (!%p1948_p7)
}
  0x64   : > { %1755 = dma.hbm_to_vmem [thread:$0]  (!%p2367_p12), %s2376_s5, 128, %s431_s7, %s2379_s28  }
  0x65   : > { %s2174_s17 = smov [#allocation10]   ;;  %s2175_s16 = smov [#allocation13]  }
  0x66   : > { %s336_s20 = sshll.u32 %s2174_s17, 4  ;;  %s360_s3 = sshll.u32 %s2175_s16, 4  ;;  %s337_s20 = int_to_ptr.vmem [resolvable:$true] %s336_s20  ;;  %s361_s3 = int_to_ptr.vmem [resolvable:$true] %s360_s3 }
  0x67   : > { %s1963_s26 = scalar_lea.vmem %s337_s20, 16  ;;  %p2687_p3 = scmp.ne.s32.totalorder %s2674_s30, 0 }
  0x68   : > { %p1964_p1 = scmp.ne.s32.totalorder %s337_s20, %s1963_s26  ;;  %s1970_s10 = scalar_lea.vmem %s337_s20, 32 }
  0x69   : > { %p1971_p2 = scmp.lt.s32.totalorder %s337_s20, %s337_s20  ;;  %p1972_p6 = scmp.lt.s32.totalorder %s1970_s10, %s1963_s26 }
  0x6a   : > { %p1966_p9 = pnand %p1964_p1, %p2687_p3 }
  0x6b   : > { %p1973_p7 = por %p1972_p6, %p1971_p2 }
  0x6c   : > { %p1967_p0 = pneg %p1966_p9 }
  0x6e   : > { %p1974_p8 = pnand %p1973_p7, %p1967_p0 }
  0x70   : > { %1977 = shalt.err (!%p1974_p8)
}
  0x71   : > { %p2688_p5 = scmp.ne.s32.totalorder %s2673_s27, 0  ;;  %s1989_s7 = scalar_lea.vmem %s361_s3, 16 }
  0x72   : > { %p1990_p10 = scmp.ne.s32.totalorder %s361_s3, %s1989_s7  ;;  %s1996_s13 = scalar_lea.vmem %s361_s3, 32 }
  0x73   : > { %1736 = dma.hbm_to_vmem [thread:$0]  (!%p2688_p5), %s2638_s4, 16, %s337_s20, [#allocation9]  }
  0x74   : > { %p1992_p4 = pnand %p1990_p10, %p2687_p3  ;;  %p1997_p1 = scmp.lt.s32.totalorder %s361_s3, %s361_s3 }
  0x75   : > { %p1998_p9 = scmp.lt.s32.totalorder %s1996_s13, %s1989_s7 }
  0x76   : > { %p1993_p13 = pneg %p1992_p4 }
  0x77   : > { %p1999_p12 = por %p1998_p9, %p1997_p1 }
  0x79   : > { %p2000_p2 = pnand %p1999_p12, %p1993_p13 }
  0x7b   : > { %2003 = shalt.err (!%p2000_p2)
}
  0x7c   : > { %1742 = dma.hbm_to_vmem [thread:$0]  (!%p2688_p5), %s2640_s6, 16, %s361_s3, [#allocation12]  }
  0x7d   : > { %s2176_s17 = smov [#allocation16]  }
  0x7e   : > { %s384_s20 = sshll.u32 %s2176_s17, 4  ;;  %s385_s20 = int_to_ptr.vmem [resolvable:$true] %s384_s20 }
  0x7f   : > { %s2015_s16 = scalar_lea.vmem %s385_s20, 16  ;;  %s2022_s26 = scalar_lea.vmem %s385_s20, 32 }
  0x80   : > { %p2016_p0 = scmp.ne.s32.totalorder %s385_s20, %s2015_s16  ;;  %p2023_p8 = scmp.lt.s32.totalorder %s385_s20, %s385_s20 }
  0x81   : > { %p2024_p10 = scmp.lt.s32.totalorder %s2022_s26, %s2015_s16 }
  0x82   : > { %p2018_p6 = pnand %p2016_p0, %p2687_p3 }
  0x83   : > { %p2025_p12 = por %p2024_p10, %p2023_p8 }
  0x84   : > { %p2019_p7 = pneg %p2018_p6 }
  0x86   : > { %p2026_p4 = pnand %p2025_p12, %p2019_p7 }
  0x88   : > { %2029 = shalt.err (!%p2026_p4)
}
  0x89   : > { %1748 = dma.hbm_to_vmem [thread:$0]  (!%p2688_p5), %s2642_s8, 16, %s385_s20, [#allocation15]  }
  0x8a   : > { %s2429_s5 = scalar_lea.hbm %s2634_s0, %s2365_s15  ;;  %s405_s7 = scalar_lea.vmem [#allocation2], %s2362_s12 }
  0x8b   : > { %s412_s13 = sshll.u32 %s405_s7, 4  ;;  %s2689_s27 = sand.u32 1, %s2162_s19   ;;  %s413_s13 = int_to_ptr.vmem [resolvable:$true] %s412_s13 }
  0x8c   : > { %s402_s14 = scalar_lea.sflag [#allocation3], %s2689_s27  ;;  %s2030_s25 = scalar_lea.hbm %s2429_s5, 128 }
  0x8d   : > { %p2031_p3 = scmp.ne.s32.totalorder %s2429_s5, %s2030_s25  ;;  %s2035_s16 = scalar_lea.hbm %s2634_s0, 256 }
  0x8e   : > { %p2036_p5 = scmp.lt.s32.totalorder %s2429_s5, %s2634_s0  ;;  %p2037_p9 = scmp.lt.s32.totalorder %s2035_s16, %s2030_s25 }
  0x8f   : > { %p2033_p13 = pnand %p2031_p3, %p2385_p11 }
  0x90   : > { %p2038_p2 = por %p2037_p9, %p2036_p5 }
  0x91   : > { %p2034_p1 = pneg %p2033_p13 }
  0x93   : > { %p2039_p0 = pnand %p2038_p2, %p2034_p1 }
  0x95   : > { %2042 = shalt.err (!%p2039_p0)
}
  0x96   : > { %s2043_s11 = scalar_lea.vmem %s413_s13, 128  ;;  %s2177_s3 = smov [#allocation2]  }
  0x97   : > { %p2044_p6 = scmp.ne.s32.totalorder %s413_s13, %s2043_s11  ;;  %s2048_s30 = sshll.u32 %s2177_s3, 4  ;;  %s2049_s30 = int_to_ptr.vmem [resolvable:$false] %s2048_s30 }
  0x98   : > { %s2050_s7 = scalar_lea.vmem %s2049_s30, 256  ;;  %p2051_p10 = scmp.lt.s32.totalorder %s413_s13, %s2049_s30 }
  0x99   : > { %p2046_p7 = pnand %p2044_p6, %p2385_p11  ;;  %p2052_p12 = scmp.lt.s32.totalorder %s2050_s7, %s2043_s11 }
  0x9b   : > { %p2047_p8 = pneg %p2046_p7  ;;  %p2053_p4 = por %p2052_p12, %p2051_p10 }
  0x9d   : > { %p2054_p3 = pnand %p2053_p4, %p2047_p8 }
  0x9f   : > { %2057 = shalt.err (!%p2054_p3)
}
  0xa0   : > { %p2690_p13 = scmp.ne.s32.totalorder %s2685_s21, 0  ;;  %s446_s17 = scalar_lea.hbm %s2636_s2, %s2365_s15 }
  0xa1   : > { %s441_s20 = scalar_lea.vmem [#allocation7], %s2362_s12  ;;  %s2058_s26 = scalar_lea.hbm %s446_s17, 128 }
  0xa2   : > { %1752 = dma.hbm_to_vmem [thread:$0]  (!%p2690_p13), %s2429_s5, 128, %s413_s13, %s402_s14  }
  0xa3   : > { %s448_s16 = sshll.u32 %s441_s20, 4  ;;  %p2059_p1 = scmp.ne.s32.totalorder %s446_s17, %s2058_s26  ;;  %s449_s16 = int_to_ptr.vmem [resolvable:$true] %s448_s16 }
  0xa4   : > { %s2063_s3 = scalar_lea.hbm %s2636_s2, 256  ;;  %p2064_p2 = scmp.lt.s32.totalorder %s446_s17, %s2636_s2 }
  0xa5   : > { %p2061_p5 = pnand %p2059_p1, %p2385_p11  ;;  %p2065_p0 = scmp.lt.s32.totalorder %s2063_s3, %s2058_s26 }
  0xa7   : > { %p2062_p9 = pneg %p2061_p5  ;;  %p2066_p6 = por %p2065_p0, %p2064_p2 }
  0xa9   : > { %p2067_p7 = pnand %p2066_p6, %p2062_p9 }
  0xab   : > { %2070 = shalt.err (!%p2067_p7)
}
  0xac   : > { %s2071_s12 = scalar_lea.vmem %s449_s16, 128  ;;  %s2178_s15 = smov [#allocation7]  }
  0xad   : > { %p2072_p8 = scmp.ne.s32.totalorder %s449_s16, %s2071_s12  ;;  %s2076_s5 = sshll.u32 %s2178_s15, 4  ;;  %s2077_s5 = int_to_ptr.vmem [resolvable:$false] %s2076_s5 }
  0xae   : > { %s2078_s13 = scalar_lea.vmem %s2077_s5, 256  ;;  %p2079_p4 = scmp.lt.s32.totalorder %s449_s16, %s2077_s5 }
  0xaf   : > { %p2074_p10 = pnand %p2072_p8, %p2385_p11  ;;  %p2080_p3 = scmp.lt.s32.totalorder %s2078_s13, %s2071_s12 }
  0xb1   : > { %p2075_p12 = pneg %p2074_p10  ;;  %p2081_p1 = por %p2080_p3, %p2079_p4 }
  0xb3   : > { %p2082_p5 = pnand %p2081_p1, %p2075_p12 }
  0xb5   : > { %2085 = shalt.err (!%p2082_p5)
}
  0xb6   : > { %1758 = dma.hbm_to_vmem [thread:$0]  (!%p2690_p13), %s446_s17, 128, %s449_s16, %s2379_s28  }
  0xb7   : > { %p2691_p9 = scmp.ne.s32.totalorder %s2672_s24, 0 }
  0xb8   : > { %s2471_s22 = sand.u32 (!%p2691_p9), 1, %s2158_s18   ;;  %p2692_p11 = scmp.ne.s32.totalorder (!%p2691_p9), %s2680_s29, 0 }
  0xb9   : > { %457 = sbr.rel (%p2691_p9) target bundleno = 1776 (0x6f0), region = 64  ;;  %s2474_s14 = sshll.u32 (!%p2691_p9), %s2471_s22, 3 }
  0xba   : > { %s460_s27 = scalar_lea.sflag (!%p2691_p9), [#allocation3], %s2471_s22  ;;  %s463_s25 = scalar_lea.vmem (!%p2691_p9), [#allocation2], %s2474_s14 }
  0xbe   : > { %2129 = dma.done.wait (%p2692_p11), %s460_s27, 128  }
  0xbf   : > { %2131 = vsyncadd (%p2692_p11), %s460_s27, 4294967168  ;;  %s468_s24 = sand.u32 1, %s2269_s23   ;;  %s472_s21 = scalar_lea.vmem [#allocation5], %s2474_s14 }
  0xc0   : > { %s469_s28 = scalar_lea.sflag [#allocation6], %s468_s24 }
  0xc1   : > { %2133 = dma.done.wait (%p2692_p11), %s469_s28, 256  }
  0xc2   : > { %2135 = vsyncadd (%p2692_p11), %s469_s28, 4294967040  ;;  %s481_s17 = scalar_lea.vmem [#allocation7], %s2474_s14  ;;  %p2693_p13 = scmp.eq.s32.totalorder %s2269_s23, 0 }
  0xc4   : > { %2137 = dma.done.wait (%p2693_p13), [#allocation9], 144   ;;  %p2694_p2 = pmov %p2693_p13 }
  0xc6   : > { %2139 = vsyncadd (%p2694_p2), [#allocation9], 4294967152  ;;  %p2695_p0 = pmov %p2694_p2 }
  0xc8   : > { %2141 = dma.done.wait (%p2695_p0), [#allocation12], 144   ;;  %p2696_p6 = pmov %p2695_p0 }
  0xc9   : > { %p2697_p7 = pmov %p2695_p0 }
  0xca   : > { %2143 = vsyncadd (%p2696_p6), [#allocation12], 4294967152 }
  0xcb   : > { %2145 = dma.done.wait (%p2697_p7), [#allocation15], 144   ;;  %p2698_p8 = pmov %p2695_p0 }
  0xcc   : > { %v2179_v0 = vmov 0.0   ;;  %vm2180_vm0 = vmmov 0   ;;  %v1825_v1 = vld [vmem:[#allocation8] sm:$0xff]   ;;  %v555_v2 = vld [vmem:[%s463_s25] sm:$0xff]  ;;  %vm572_vm1 = vcmask 130048   ;;  %vm738_vm2 = vcmask 64512  }
  0xcd   : > { %2147 = vsyncadd (%p2698_p8), [#allocation15], 4294967152  ;;  %1628 = vmatprep.subr.bf16.mxu1 %v2179_v0  ;;  %1630 = vmatprep.mubr.msk.bf16.mxu1 %vm2180_vm0, %v2179_v0  ;;  %v556_v3 = vpack.c.bf16 %v555_v2, %v555_v2  ;;  %v1826_v4 = vld [vmem:[#allocation11] sm:$0xff]   ;;  %v1581_v11 = vld [vmem:[#allocation13] ss:$0 sm:$0xff]  ;;  %s2181_s29 = smov 112  }
  0xce   : > { %1640 = vmatprep.subr.bf16.mxu0 %v2179_v0  ;;  %1642 = vmatprep.mubr.msk.bf16.mxu0 %vm2180_vm0, %v2179_v0  ;;  %v616_v5 = vld [vmem:[%s472_s21] sm:$0xff]  ;;  %s2182_s20 = smov 120   ;;  %v1827_v22 = vld [vmem:[#allocation14] sm:$0xff]   ;;  %v1584_v33 = vld [vmem:[#allocation16] ss:$0 sm:$0xff]  ;;  %s2183_s16 = smov 104  }
  0xcf   : > { %1629 = vmatpush3.bf16.msra.mxu1 %v1825_v1  ;;  %v617_v6 = vpack.c.bf16 %v616_v5, %v616_v5  ;;  %v1578_v12 = vld [vmem:[#allocation10] ss:$0 sm:$0xff]  ;;  %v676_v23 = vld [vmem:[%s481_s17] sm:$0xff]  ;;  %1641 = vmatpush3.bf16.msra.mxu0 %v1827_v22  ;;  %s2184_s26 = smov 16   ;;  %s2185_s10 = smov 8   ;;  %vm1297_vm3 = vcmask 195584  }
  0xd0   : > { %1634 = vmatprep.subr.bf16.mxu1 %v2179_v0  ;;  %v677_v24 = vpack.c.bf16 %v676_v23, %v676_v23  ;;  %1652 = vmatprep.subr.mxu0 %v2179_v0  ;;  %s2186_s12 = smov 24   ;;  %vm1323_vm4 = vcmask 261120   ;;  %s2699_s15 = sld [smem:[#allocation28_spill]] }
  0xd1   : > { %s2700_s27 = sld [smem:[#allocation33_spill]]  ;;  %s1600_s25 = sshll.u32 %s2269_s23, 7 }
  0xd2   : > { %1631 = vmatmul.mubr.msk.bf16.vlgmr.msra.gmra.mxu1 %vm572_vm1, %v556_v3  ;;  %1643 = vmatmul.mubr.msk.bf16.vlgmr.msra.gmra.mxu0 %vm572_vm1, %v677_v24  ;;  %s553_s24 = scalar_lea.vmem [#allocation17], %s2474_s14  ;;  %s2187_s23 = smov [#allocation17]  }
  0xd3   : > { %1635 = vmatpush3.bf16.msra.mxu1 %v1826_v4  ;;  %1636 = vmatprep.mubr.msk.bf16.mxu1 %vm2180_vm0, %v2179_v0  ;;  %s1382_s28 = sshll.u32 %s553_s24, 4  ;;  %s2090_s14 = sshll.u32 %s2187_s23, 4  ;;  %s2593_s28 = int_to_ptr.vmem [resolvable:$true] %s1382_s28  ;;  %s2091_s14 = int_to_ptr.vmem [resolvable:$false] %s2090_s14 }
  0xd4   : > { %1646 = vmatprep.subr.bf16.mxu1 %v2179_v0  ;;  %1654 = vmatprep.mubr.msk.f32.mxu0 %vm2180_vm0, %v2179_v0  ;;  %p2093_p1 = scmp.lt.s32.totalorder %s2593_s28, %s2091_s14 }
  0xd6   : > { %p2702_p12 = scmp.ne.s32.totalorder %s2699_s15, 0 }
  0xda   : > { %1637 = vmatmul.mubr.msk.bf16.vlgmr.msra.gmra.mxu1 %vm572_vm1, %v617_v6 }
  0xdb   : > { %1648 = vmatprep.mubr.msk.bf16.mxu1 %vm2180_vm0, %v2179_v0 }
 0x192   : > { %v610_v7 = vpop.f32.mrf.mxu1  ;;  %v730_v34 = vpop.f32.mrf.mxu0 }
 0x193   : > { %v611_v16 = vadd.f32 %v1578_v12, %v610_v7  ;;  %v731_v36 = vadd.f32 %v1584_v33, %v730_v34  ;;  %v1829_v34 = vld [vmem:[%s2643_s9] sm:$0xff]  }
 0x194   : > { %v1632_v8 = vpop.f32.mrf.mxu1  ;;  %v1644_v37 = vpop.f32.mrf.mxu0 }
 0x195   : > { %v736_v21 = vpack.c.bf16 %v611_v16, %v611_v16  ;;  %1653 = vmatpush3.msra.mxu0 %v731_v36 }
 0x196   : > { %v613_v9 = vpop.f32.mrf.mxu1  ;;  %v733_v39 = vpop.f32.mrf.mxu0  ;;  %1663 = vmatprep.subr.mxu0 %v2179_v0 }
 0x198   : > { %v1633_v10 = vpop.f32.mrf.mxu1  ;;  %v1645_v41 = vpop.f32.mrf.mxu0 }
 0x19a   : > { %v670_v13 = vpop.f32.mrf.mxu1 }
 0x19b   : > { %v671_v14 = vadd.f32 %v1581_v11, %v670_v13 }
 0x19c   : > { %v1638_v15 = vpop.f32.mrf.mxu1 }
 0x19d   : > { %v2515_v17 = vpack.c.bf16 %v671_v14, %v671_v14 }
 0x19e   : > { %v673_v18 = vpop.f32.mrf.mxu1 }
 0x19f   : > { %1011 = vrot.lane.b32.xlu1 %v2515_v17, %s2181_s29  ;;  %873 = vrot.lane.b32.xlu0 %v2515_v17, %s2182_s20  ;;  %v743_v19 = vsel %vm738_vm2, %v2515_v17, 0 }
 0x1a0   : > { %v1639_v20 = vpop.f32.mrf.mxu1  ;;  %1647 = vmatpush3.bf16.xpose.msra.mxu1 %v743_v19 }
 0x1a1   : > { %1657 = vmatprep.subr.bf16.mxu1 %v2179_v0 }
 0x1a3   : > { %1009 = vrot.lane.b32.xlu1 %v736_v21, %s2181_s29  ;;  %870 = vrot.lane.b32.xlu0 %v736_v21, %s2182_s20 }
 0x1a7   : > { %1649 = vmatmul.mubr.msk.bf16.vlgmr.msra.gmra.mxu1 %vm738_vm2, %v736_v21 }
 0x1a8   : > { %1659 = vmatprep.mubr.msk.bf16.mxu1 %vm2180_vm0, %v2179_v0 }
 0x211   : > { %v874_v25 = vpop.permute.xlu0 %873  ;;  %v1012_v27 = vpop.permute.xlu1 %1011 }
 0x212   : > { %v879_v26 = vsel %vm738_vm2, %v874_v25, 0  ;;  %v1017_v29 = vsel %vm738_vm2, %v1012_v27, 0 }
 0x213   : > { %1658 = vmatpush3.bf16.xpose.msra.mxu1 %v879_v26 }
 0x214   : > { %1668 = vmatprep.subr.bf16.mxu1 %v2179_v0 }
 0x215   : > { %v871_v28 = vpop.permute.xlu0 %870  ;;  %v1010_v30 = vpop.permute.xlu1 %1009 }
 0x21a   : > { %1660 = vmatmul.mubr.msk.bf16.vlgmr.msra.gmra.mxu1 %vm738_vm2, %v871_v28 }
 0x21b   : > { %1669 = vmatpush3.bf16.xpose.msra.mxu1 %v1017_v29  ;;  %1670 = vmatprep.mubr.msk.bf16.mxu1 %vm2180_vm0, %v2179_v0 }
 0x21c   : > { %1685 = vmatprep.subr.mxu1 %v2179_v0 }
 0x222   : > { %1671 = vmatmul.mubr.msk.bf16.vlgmr.msra.gmra.mxu1 %vm738_vm2, %v1010_v30 }
 0x223   : > { %1687 = vmatprep.mubr.msk.f32.mxu1 %vm2180_vm0, %v2179_v0 }
 0x267   : > { %v779_v31 = vpop.f32.mrf.mxu1 }
 0x268   : > { %v785_v32 = vsel %vm738_vm2, %v779_v31, -inf }
 0x269   : > { %786 = vmax.xlane.f32.xlu0 %v785_v32  ;;  %v1650_v35 = vpop.f32.mrf.mxu1  ;;  %v1828_v32 = vld [vmem:[%s2643_s9 + $0x8] sm:$0xff]  }
 0x26b   : > { %v782_v38 = vpop.f32.mrf.mxu1 }
 0x26d   : > { %v1651_v40 = vpop.f32.mrf.mxu1 }
 0x2da   : > { %v915_v42 = vpop.f32.mrf.mxu1 }
 0x2db   : > { %v921_v43 = vsel %vm738_vm2, %v915_v42, -inf }
 0x2dc   : > { %922 = vmax.xlane.f32.xlu1 %v921_v43  ;;  %v1661_v44 = vpop.f32.mrf.mxu1 }
 0x2de   : > { %v918_v45 = vpop.f32.mrf.mxu1 }
 0x2e0   : > { %v1662_v46 = vpop.f32.mrf.mxu1 }
 0x2e2   : > { %v1053_v47 = vpop.f32.mrf.mxu1 }
 0x2e3   : > { %v1059_v48 = vsel %vm738_vm2, %v1053_v47, -inf }
 0x2e4   : > { %1060 = vmax.xlane.f32.xlu0 %v1059_v48  ;;  %v1672_v49 = vpop.f32.mrf.mxu1  ;;  %v1595_v48 = vld [vmem:[%s2700_s27] ss:$0 sm:$0xff] }
 0x2e6   : > { %v1056_v50 = vpop.f32.mrf.mxu1 }
 0x2e8   : > { %v1673_v51 = vpop.f32.mrf.mxu1 }
 0x2ed   : > { %1068 = vrot.lane.b32.xlu1 %v731_v36, %s2181_s29  ;;  %s2701_s29 = sld [smem:[#allocation34_spill]] }
 0x2f1   : > { %1148 = vrot.lane.b32.xlu1 %v2515_v17, %s2183_s16 }
 0x2f2   : > { %v787_v52 = vpop.xlane.xlu0 %786 }
 0x2f3   : > { %v788_v53 = vsub.f32 %v779_v31, %v787_v52 }
 0x2f5   : > { %v789_v54 = vmul.f32 1.442695, %v788_v53 }
 0x2f7   : > { %1830 = vpow2.f32 %v789_v54 }
 0x2fa   : > { %931 = vrot.lane.b32.xlu0 %v731_v36, %s2182_s20  ;;  %s2591_s20 = scalar_lea.hbm %s2701_s29, %s1600_s25 }
 0x2fe   : > { %1146 = vrot.lane.b32.xlu0 %v736_v21, %s2183_s16 }
 0x302   : > { %1205 = vrot.lane.b32.xlu0 %v731_v36, %s2183_s16  ;;  %s1369_s16 = scalar_lea.sflag [#allocation4], %s2471_s22 }
 0x304   : > { %v1831_v55 = vpop.eup %1830 }
 0x305   : > { %1655 = vmatmul.mubr.msk.f32.vlgmr.msra.gmra.mxu0 %vm738_vm2, %v1831_v55  ;;  %v791_v20 = vsel %vm738_vm2, %v1831_v55, 0.0 }
 0x306   : > { %1665 = vmatprep.mubr.msk.f32.mxu0 %vm2180_vm0, %v2179_v0 }
 0x365   : > { %v923_v56 = vpop.xlane.xlu1 %922 }
 0x366   : > { %v924_v57 = vsub.f32 %v915_v42, %v923_v56 }
 0x368   : > { %v925_v58 = vmul.f32 1.442695, %v924_v57 }
 0x369   : > { %v1069_v2 = vpop.permute.xlu1 %1068 }
 0x36a   : > { %1832 = vpow2.f32 %v925_v58 }
 0x36d   : > { %v1061_v59 = vpop.xlane.xlu0 %1060  ;;  %v1149_v5 = vpop.permute.xlu1 %1148 }
 0x36e   : > { %v1062_v60 = vsub.f32 %v1053_v47, %v1061_v59  ;;  %v1154_v7 = vsel %vm738_vm2, %v1149_v5, 0 }
 0x370   : > { %v1063_v61 = vmul.f32 1.442695, %v1062_v60 }
 0x371   : > { %v932_v62 = vpop.permute.xlu0 %931 }
 0x372   : > { %1834 = vpow2.f32 %v1063_v61  ;;  %1664 = vmatpush3.msra.mxu0 %v932_v62 }
 0x373   : > { %1674 = vmatprep.subr.mxu0 %v2179_v0 }
 0x375   : > { %v1147_v63 = vpop.permute.xlu0 %1146 }
 0x377   : > { %v1833_v1 = vpop.eup %1832 }
 0x378   : > { %1666 = vmatmul.mubr.msk.f32.vlgmr.msra.gmra.mxu0 %vm738_vm2, %v1833_v1  ;;  %v927_v3 = vsel %vm738_vm2, %v1833_v1, 0.0 }
 0x379   : > { %928 = vadd.xlane.f32.xlu0 %v927_v3  ;;  %1675 = vmatpush3.msra.mxu0 %v1069_v2  ;;  %v1206_v4 = vpop.permute.xlu0 %1205 }
 0x37a   : > { %1686 = vmatpush3.msra.mxu1 %v1206_v4  ;;  %1676 = vmatprep.mubr.msk.f32.mxu0 %vm2180_vm0, %v2179_v0 }
 0x37b   : > { %1679 = vmatprep.subr.bf16.mxu0 %v2179_v0 }
 0x37f   : > { %v1835_v6 = vpop.eup %1834 }
 0x380   : > { %1677 = vmatmul.mubr.msk.f32.vlgmr.msra.gmra.mxu0 %vm738_vm2, %v1835_v6  ;;  %v1065_v18 = vsel %vm738_vm2, %v1835_v6, 0.0 }
 0x381   : > { %1680 = vmatpush3.bf16.xpose.msra.mxu0 %v1154_v7  ;;  %1681 = vmatprep.mubr.msk.bf16.mxu0 %vm2180_vm0, %v2179_v0 }
 0x382   : > { %1690 = vmatprep.subr.bf16.mxu0 %v2179_v0 }
 0x388   : > { %1682 = vmatmul.mubr.msk.bf16.vlgmr.msra.gmra.mxu0 %vm738_vm2, %v1147_v63 }
 0x389   : > { %1694 = vmatprep.mubr.msk.bf16.mxu0 %vm2180_vm0, %v2179_v0  ;;  %1691 = vmatpush3.bf16.msra.mxu0 %v1828_v32 }
 0x38a   : > { %1692 = vmatprep.subr.bf16.mxu0 %v2179_v0 }
 0x38d   : > { %1693 = vmatpush3.bf16.msra.mxu0 %v1829_v34 }
 0x3c5   : > { %v863_v8 = vpop.f32.mrf.mxu0 }
 0x3c7   : > { %v1656_v9 = vpop.f32.mrf.mxu0 }
 0x402   : > { %v929_v29 = vpop.xlane.xlu0 %928 }
 0x438   : > { %v1003_v10 = vpop.f32.mrf.mxu0 }
 0x43a   : > { %v1667_v11 = vpop.f32.mrf.mxu0 }
 0x440   : > { %v1140_v12 = vpop.f32.mrf.mxu0 }
 0x442   : > { %v1678_v13 = vpop.f32.mrf.mxu0 }
 0x448   : > { %v1190_v14 = vpop.f32.mrf.mxu0 }
 0x449   : > { %v1196_v15 = vsel %vm738_vm2, %v1190_v14, -inf }
 0x44a   : > { %1197 = vmax.xlane.f32.xlu1 %v1196_v15  ;;  %v1683_v16 = vpop.f32.mrf.mxu0 }
 0x44c   : > { %v1193_v17 = vpop.f32.mrf.mxu0 }
 0x44e   : > { %1066 = vadd.xlane.f32.xlu1 %v1065_v18  ;;  %v1684_v19 = vpop.f32.mrf.mxu0 }
 0x452   : > { %792 = vadd.xlane.f32.xlu1 %v791_v20 }
 0x4d3   : > { %v1198_v21 = vpop.xlane.xlu1 %1197 }
 0x4d4   : > { %v1199_v22 = vsub.f32 %v1190_v14, %v1198_v21 }
 0x4d6   : > { %v1200_v23 = vmul.f32 1.442695, %v1199_v22 }
 0x4d7   : > { %v1067_v24 = vpop.xlane.xlu1 %1066 }
 0x4d8   : > { %1836 = vpow2.f32 %v1200_v23 }
 0x4d9   : > { %1838 = vrcp.f32 %v1067_v24 }
 0x4da   : > { %1840 = vrcp.f32 %v929_v29 }
 0x4db   : > { %v793_v39 = vpop.xlane.xlu1 %792 }
 0x4e5   : > { %v1837_v25 = vpop.eup %1836 }
 0x4e6   : > { %v1839_v26 = vpop.eup %1838  ;;  %1688 = vmatmul.mubr.msk.f32.vlgmr.msra.gmra.mxu1 %vm738_vm2, %v1837_v25  ;;  %v1202_v27 = vsel %vm738_vm2, %v1837_v25, 0.0 }
 0x4e7   : > { %1203 = vadd.xlane.f32.xlu0 %v1202_v27  ;;  %v1145_v28 = vmul.f32 %v1839_v26, %v1140_v12  ;;  %v1841_v30 = vpop.eup %1840 }
 0x4e8   : > { %v1008_v31 = vmul.f32 %v1841_v30, %v1003_v10 }
 0x4e9   : > { %1288 = vrot.lane.b32.xlu1 %v1145_v28, %s2184_s26  ;;  %s2086_s26 = scalar_lea.vmem %s2593_s28, 128 }
 0x4ea   : > { %p2087_p10 = scmp.ne.s32.totalorder %s2593_s28, %s2086_s26 }
 0x4ec   : > { %p2088_p4 = pnand %p2087_p10, %p2702_p12 }
 0x4ee   : > { %p2089_p3 = pneg %p2088_p4 }
 0x4fd   : > { %1284 = vrot.lane.b32.xlu0 %v1008_v31, %s2185_s10  ;;  %s2092_s10 = scalar_lea.vmem %s2091_s14, 256 }
 0x4fe   : > { %p2094_p5 = scmp.lt.s32.totalorder %s2092_s10, %s2086_s26 }
 0x500   : > { %p2095_p9 = por %p2094_p5, %p2093_p1 }
 0x502   : > { %p2096_p11 = pnand %p2095_p9, %p2089_p3 }
 0x55b   : > { %v1289_v42 = vpop.permute.xlu1 %1288 }
 0x570   : > { %v1204_v33 = vpop.xlane.xlu0 %1203 }
 0x571   : > { %1842 = vrcp.f32 %v1204_v33 }
 0x572   : > { %1844 = vrcp.f32 %v793_v39 }
 0x574   : > { %v1285_v41 = vpop.permute.xlu0 %1284 }
 0x57e   : > { %v1843_v35 = vpop.eup %1842 }
 0x57f   : > { %v1845_v40 = vpop.eup %1844 }
 0x580   : > { %v868_v0 = vmul.f32 %v1845_v40, %v863_v8 }
 0x582   : > { %v1295_v43 = vsel %vm738_vm2, %v868_v0, %v1285_v41 }
 0x583   : > { %v1296_v44 = vsel %vm572_vm1, %v1295_v43, %v1289_v42 }
 0x5a6   : > { %v1277_v36 = vpop.f32.mrf.mxu1 }
 0x5a7   : > { %v1282_v37 = vmul.f32 %v1843_v35, %v1277_v36 }
 0x5a8   : > { %v1689_v38 = vpop.f32.mrf.mxu1 }
 0x5a9   : > { %1292 = vrot.lane.b32.xlu1 %v1282_v37, %s2186_s12 }
 0x61b   : > { %v1293_v45 = vpop.permute.xlu1 %1292 }
 0x61c   : > { %v1298_v46 = vsel %vm1297_vm3, %v1296_v44, %v1293_v45 }
 0x61d   : > { %v1299_v47 = vpack.c.bf16 %v1298_v46, %v1298_v46 }
 0x61f   : > { %1695 = vmatmul.mubr.msk.bf16.vlgmr.msra.gmra.mxu0 %vm1323_vm4, %v1299_v47 }
 0x6df   : > { %v1361_v49 = vpop.f32.mrf.mxu0 }
 0x6e0   : > { %v1362_v50 = vadd.f32 %v1595_v48, %v1361_v49 }
 0x6e1   : > { %v1696_v51 = vpop.f32.mrf.mxu0 }
 0x6e2   : > { %1367 = vst [vmem:[%s553_s24] sm:$0xff] %v1362_v50 }
 0x6e3   : > { %v1364_v52 = vpop.f32.mrf.mxu0 }
 0x6e4   : > { %2099 = shalt.err (!%p2096_p11)
}
 0x6e5   : > { %s2100_s11 = scalar_lea.hbm %s2591_s20, 128  ;;  %s2104_s30 = scalar_lea.hbm %s2701_s29, 256 }
 0x6e6   : > { %p2101_p13 = scmp.ne.s32.totalorder %s2591_s20, %s2100_s11  ;;  %p2105_p6 = scmp.lt.s32.totalorder %s2591_s20, %s2701_s29 }
 0x6e7   : > { %p2106_p7 = scmp.lt.s32.totalorder %s2104_s30, %s2100_s11 }
 0x6e8   : > { %p2102_p2 = pnand %p2101_p13, %p2702_p12 }
 0x6e9   : > { %p2107_p8 = por %p2106_p7, %p2105_p6 }
 0x6ea   : > { %p2103_p0 = pneg %p2102_p2 }
 0x6ec   : > { %p2108_p10 = pnand %p2107_p8, %p2103_p0 }
 0x6ee   : > { %2111 = shalt.err (!%p2108_p10)
}
 0x6ef   : > { %1728 = dma.vmem_to_hbm [thread:$0]  (%p2702_p12), %s2593_s28, 128, %s2591_s20, %s1369_s16   ;;  %v1697_v53 = vpop.f32.mrf.mxu0 }
 0x6f0 PF: > { %s2703_s5 = sld [smem:[#allocation24_spill]] }
 0x6f1   : > { %s2704_s13 = sld [smem:[#allocation29_spill]] }
 0x6f2   : > { %s2705_s27 = sld [smem:[#allocation25_spill]] }
 0x6f6   : > { %s1394_s25 = sand.u32 1, %s2703_s5  }
 0x6f7   : > { %p2706_p4 = scmp.ne.s32.totalorder %s2704_s13, 0  ;;  %s1395_s24 = scalar_lea.sflag [#allocation4], %s1394_s25 }
 0x6f8   : > { %p2707_p3 = scmp.ge.s32.totalorder %s2705_s27, 2 }
 0x6fa   : > { %p1760_p1 = pnand %p2707_p3, %p2706_p4 }
 0x6fc   : > { %p1761_p5 = pneg %p1760_p1 }
 0x6fe   : > { %2149 = dma.done.wait (%p1761_p5), %s1395_s24, 128  }
 0x6ff   : > { %2151 = vsyncadd (%p1761_p5), %s1395_s24, 4294967168  ;;  %s2708_s20 = sld [smem:[#allocation26_spill]]  ;;  %s2710_s17 = smov %s2158_s18 }
 0x700   : > { %s2709_s15 = sld [smem:[#allocation27_spill]]  ;;  %s2711_s18 = smov %s2162_s19 }
 0x705   : > { %p30_p9 = scmp.ge.s32.totalorder %s2708_s20, 4  }
 0x706   : > { %s2712_s19 = smov %s2709_s15 }
 0x707   :  { %32 = sbr.rel (!%p30_p9) target bundleno = 16 (0x10), region = 157 }
 0x70c   :  { %1400 = vsyncpa [#allocation3], 1 }
 0x70d   :  { %1402 = vsyncpa [#allocation3 + $0x1], 1 }
 0x70e   :  { %1403 = vsyncpa [#allocation6], 1 }
 0x70f   :  { %1405 = vsyncpa [#allocation6 + $0x1], 1 }
 0x710   :  { %1406 = vsyncpa [#allocation9], 1 }
 0x711   :  { %1407 = vsyncpa [#allocation12], 1 }
 0x712   :  { %1408 = vsyncpa [#allocation15], 1 }
 0x713   :  { %1409 = vsyncpa [#allocation4], 1 }
 0x714   :  { %1411 = vsyncpa [#allocation4 + $0x1], 1 }

</bundles_post_ra>
